<compile_context>
chip_gen: v7x
topology: tpu7x:2x2x1
jax: 0.10.0
libtpu: 0.0.40
codegen_flags: <defaults>
</compile_context>

<pallas_src>
import jax
import jax.numpy as jnp
from jax.experimental import pallas as pl
from jax.experimental.pallas import tpu as pltpu


def _round_up(n, m):
    return ((n + m - 1) // m) * m


def ae_part3_kernel(xt_ref, w1_ref, b1_ref, w2_ref, b2_ref, o_ref):
    xt = xt_ref[...]                   # (F, TILE_B)  batch on lanes (lane-dense)
    w1 = w1_ref[...]                   # (10, 5)      PyTorch (out, in) layout
    # h^T = W1 @ x^T : canonical (10,5)@(5,TILE_B) MXU matmul, f32 accumulation,
    # no transpose of the big operand.
    h = jnp.dot(w1, xt, preferred_element_type=jnp.float32)          # (10, TILE_B)
    h = jnp.maximum(h + b1_ref[...], 0.0)                            # b1 (10,1) broadcasts over lanes
    # y^T = W2 @ h^T : (1,10)@(10,TILE_B) -> (1, TILE_B), lane-dense result.
    y = jnp.dot(w2_ref[...], h, preferred_element_type=jnp.float32)
    y = jnp.maximum(y + b2_ref[0], 0.0)                              # b2 scalar from SMEM
    o_ref[...] = y.astype(o_ref.dtype)


def ae_part3_forward_feature_major(xt, w1, b1, w2, b2, *, tile_b=65536,
                                   out_dtype=jnp.float32, vmem_limit_bytes=None):
    """Forward pass of AE_part3 on feature-major activations.

    xt: (5, B)   activations, batch on the minor (lane) axis (f32 or bf16)
    w1: (10, 5)  hidden2 weight, PyTorch (out, in) layout (f32 or bf16)
    b1: (10,)    hidden2 bias (f32)
    w2: (1, 10)  output weight, PyTorch layout (f32)
    b2: (1,)     output bias (f32)
    Returns (B, 1) in out_dtype.
    """
    F, B = xt.shape
    H = w1.shape[0]

    # Tile the batch (lane axis).  No padding of x: Pallas masks the ragged
    # final block's loads/stores.
    tb = max(128, _round_up(min(tile_b, _round_up(B, 128)), 128))
    if B > 128:
        # Keep >= 2 grid steps when the batch allows it so v7x's two
        # TensorCores both get work under dimension_semantics=("parallel",).
        tb = min(tb, max(128, _round_up(pl.cdiv(B, 2), 128)))
    grid = (pl.cdiv(B, tb),)

    b1c = jnp.asarray(b1, jnp.float32).reshape(H, 1)   # column -> broadcast over lanes
    w2r = jnp.asarray(w2, jnp.float32).reshape(1, H)
    b2s = jnp.asarray(b2, jnp.float32).reshape(1)

    out = pl.pallas_call(
        ae_part3_kernel,
        out_shape=jax.ShapeDtypeStruct((1, B), out_dtype),
        grid=grid,
        in_specs=[
            pl.BlockSpec((F, tb), lambda i: (0, i)),            # x^T: batch tiled on lanes
            pl.BlockSpec((H, F), lambda i: (0, 0)),             # w1: VMEM-resident
            pl.BlockSpec((H, 1), lambda i: (0, 0)),             # b1: VMEM-resident
            pl.BlockSpec((1, H), lambda i: (0, 0)),             # w2: VMEM-resident
            pl.BlockSpec(memory_space=pltpu.MemorySpace.SMEM),  # b2: scalar in SMEM
        ],
        out_specs=pl.BlockSpec((1, tb), lambda i: (0, i)),      # lane-dense output
        compiler_params=pltpu.CompilerParams(
            dimension_semantics=("parallel",),                  # v7x: 2 TCs share batch
            vmem_limit_bytes=vmem_limit_bytes),
    )(xt, w1, b1c, w2r, b2s)

    return out.reshape(B, 1)


def ae_part3_forward(x, w1, b1, w2, b2, **kwargs):
    """PyTorch-layout entry point: x is (B, 5) as in the nn.Module.

    Does one wrapper transpose to the feature-major (5, B) layout the kernel
    wants (one extra HBM pass over x, but it removes the in-kernel big-operand
    transpose and the 25.6x lane-sparse VMEM blow-up).  If the producer can
    emit x already as (5, B), call ae_part3_forward_feature_major directly.
    """
    return ae_part3_forward_feature_major(jnp.transpose(x), w1, b1, w2, b2, **kwargs)


def init_params(key):
    """Deterministic init mimicking torch.nn.Linear (weights kept in PyTorch
    (out_features, in_features) layout; biases 1-D)."""
    k1, k2, k3, k4 = jax.random.split(key, 4)
    bound1 = 1.0 / (5.0 ** 0.5)                     # hidden2: Linear(5, 10)
    w1 = jax.random.uniform(k1, (10, 5), jnp.float32, -bound1, bound1)
    b1 = jax.random.uniform(k2, (10,), jnp.float32, -bound1, bound1)
    bound2 = 1.0 / (10.0 ** 0.5)                    # output: Linear(10, 1)
    w2 = jax.random.uniform(k3, (1, 10), jnp.float32, -bound2, bound2)
    b2 = jax.random.uniform(k4, (1,), jnp.float32, -bound2, bound2)
    return w1, b1, w2, b2


if __name__ == "__main__":
    key = jax.random.PRNGKey(0)
    kx, kp = jax.random.split(key)
    w1, b1, w2, b2 = init_params(kp)

    def ref_fn(xv):  # plain-JAX reference, same math as the PyTorch forward (f32)
        h = jnp.maximum(xv @ w1.T + b1, 0.0)
        return jnp.maximum(h @ w2.T + b2, 0.0)

    # 1) Small batch implied by the module: (8, 5), PyTorch layout.
    x = jax.random.normal(kx, (8, 5), dtype=jnp.float32)
    out = jax.block_until_ready(ae_part3_forward(x, w1, b1, w2, b2))
    assert out.shape == (8, 1)
    assert jnp.allclose(out, ref_fn(x), atol=1e-5), "mismatch vs reference (B=8)"

    # 2) Multi-step grid with a ragged batch (B=333, not a multiple of the tile,
    #    no wrapper padding -> exercises masked final-block loads/stores).
    x2 = jax.random.normal(kx, (333, 5), dtype=jnp.float32)
    out2 = jax.block_until_ready(ae_part3_forward(x2, w1, b1, w2, b2, tile_b=128))
    assert out2.shape == (333, 1)
    assert jnp.allclose(out2, ref_fn(x2), atol=1e-5), "mismatch vs reference (B=333)"

    # 3) Feature-major producer path (no wrapper transpose) with bf16
    #    activations/weights; f32 accumulate/bias as always.
    out3 = jax.block_until_ready(
        ae_part3_forward_feature_major(
            jnp.transpose(x2).astype(jnp.bfloat16), w1.astype(jnp.bfloat16),
            b1, w2, b2, tile_b=256))
    assert out3.shape == (333, 1)
    assert jnp.allclose(out3, ref_fn(x2), atol=5e-2), "mismatch vs reference (bf16)"

    print("KERNEL_OK")
</pallas_src>

<mosaic_0001>
module attributes {stable_mosaic.version = 11 : i64} {
  func.func @ae_part3_kernel(%arg0: i32, %arg1: memref<5x128xf32, #tpu.memory_space<vmem>>, %arg2: memref<10x5xf32, #tpu.memory_space<vmem>>, %arg3: memref<10x1xf32, #tpu.memory_space<vmem>>, %arg4: memref<1x10xf32, #tpu.memory_space<vmem>>, %arg5: memref<1xf32, #tpu.memory_space<smem>>, %arg6: memref<1x128xf32, #tpu.memory_space<vmem>>) attributes {dimension_semantics = [#tpu.dimension_semantics<parallel>], iteration_bounds = array<i64: 1>, scalar_prefetch = 0 : i64, scratch_operands = 0 : i64, tpu.core_type = #tpu.core_type<tc>, window_params = [{transform_indices = @transform_0, window_bounds = array<i64: 5, 128>}, {pipeline_mode = #tpu.pipeline_mode<synchronous>, transform_indices = @transform_1, window_bounds = array<i64: 10, 5>}, {pipeline_mode = #tpu.pipeline_mode<synchronous>, transform_indices = @transform_2, window_bounds = array<i64: 10, 1>}, {pipeline_mode = #tpu.pipeline_mode<synchronous>, transform_indices = @transform_3, window_bounds = array<i64: 1, 10>}, {transform_indices = @transform_4, window_bounds = array<i64: 1>}, {transform_indices = @transform_5, window_bounds = array<i64: 1, 128>}]} {
    %c0 = arith.constant 0 : index
    %c0_0 = arith.constant 0 : index
    %0 = vector.load %arg1[%c0, %c0_0] : memref<5x128xf32, #tpu.memory_space<vmem>>, vector<5x128xf32>
    %c0_1 = arith.constant 0 : index
    %c0_2 = arith.constant 0 : index
    %1 = vector.load %arg2[%c0_1, %c0_2] : memref<10x5xf32, #tpu.memory_space<vmem>>, vector<10x5xf32>
    %cst = arith.constant dense<0.000000e+00> : vector<10x128xf32>
    %2 = tpu.matmul %1, %0, %cst {dimension_numbers = #tpu.dot_dimension_numbers<[1], [0], [0], [1], [0, 0, 1, 1], [], []>} : vector<10x5xf32>, vector<5x128xf32>, vector<10x128xf32> -> vector<10x128xf32>
    %c0_3 = arith.constant 0 : index
    %c0_4 = arith.constant 0 : index
    %3 = vector.load %arg3[%c0_3, %c0_4] : memref<10x1xf32, #tpu.memory_space<vmem>>, vector<10x1xf32>
    %4 = vector.broadcast %3 : vector<10x1xf32> to vector<10x128xf32>
    %5 = arith.addf %2, %4 : vector<10x128xf32>
    %cst_5 = arith.constant 0.000000e+00 : f32
    %6 = vector.broadcast %cst_5 : f32 to vector<10x128xf32>
    %7 = arith.maximumf %5, %6 : vector<10x128xf32>
    %c0_6 = arith.constant 0 : index
    %c0_7 = arith.constant 0 : index
    %8 = vector.load %arg4[%c0_6, %c0_7] : memref<1x10xf32, #tpu.memory_space<vmem>>, vector<1x10xf32>
    %cst_8 = arith.constant dense<0.000000e+00> : vector<1x128xf32>
    %9 = tpu.matmul %8, %7, %cst_8 {dimension_numbers = #tpu.dot_dimension_numbers<[1], [0], [0], [1], [0, 0, 1, 1], [], []>} : vector<1x10xf32>, vector<10x128xf32>, vector<1x128xf32> -> vector<1x128xf32>
    %c0_9 = arith.constant 0 : index
    %10 = memref.load %arg5[%c0_9] : memref<1xf32, #tpu.memory_space<smem>>
    %11 = vector.broadcast %10 : f32 to vector<1x128xf32>
    %12 = arith.addf %9, %11 : vector<1x128xf32>
    %cst_10 = arith.constant 0.000000e+00 : f32
    %13 = vector.broadcast %cst_10 : f32 to vector<1x128xf32>
    %14 = arith.maximumf %12, %13 : vector<1x128xf32>
    %c0_11 = arith.constant 0 : index
    %c0_12 = arith.constant 0 : index
    %15 = vector.load %arg6[%c0_11, %c0_12] : memref<1x128xf32, #tpu.memory_space<vmem>>, vector<1x128xf32>
    tpu.vector_store %arg6[%c0_11, %c0_12], %14 {strides = array<i32>} : memref<1x128xf32, #tpu.memory_space<vmem>>, vector<1x128xf32>,
    return
  }
  func.func @transform_0(%arg0: i32) -> (i32, i32) {
    %c0_i32 = arith.constant 0 : i32
    %c0_i32_0 = arith.constant 0 : i32
    return %c0_i32, %arg0 : i32, i32
  }
  func.func @transform_1(%arg0: i32) -> (i32, i32) {
    %c0_i32 = arith.constant 0 : i32
    %c0_i32_0 = arith.constant 0 : i32
    %c0_i32_1 = arith.constant 0 : i32
    return %c0_i32, %c0_i32_0 : i32, i32
  }
  func.func @transform_2(%arg0: i32) -> (i32, i32) {
    %c0_i32 = arith.constant 0 : i32
    %c0_i32_0 = arith.constant 0 : i32
    %c0_i32_1 = arith.constant 0 : i32
    return %c0_i32, %c0_i32_0 : i32, i32
  }
  func.func @transform_3(%arg0: i32) -> (i32, i32) {
    %c0_i32 = arith.constant 0 : i32
    %c0_i32_0 = arith.constant 0 : i32
    %c0_i32_1 = arith.constant 0 : i32
    return %c0_i32, %c0_i32_0 : i32, i32
  }
  func.func @transform_4(%arg0: i32) -> i32 {
    %c0_i32 = arith.constant 0 : i32
    %c0_i32_0 = arith.constant 0 : i32
    return %c0_i32 : i32
  }
  func.func @transform_5(%arg0: i32) -> (i32, i32) {
    %c0_i32 = arith.constant 0 : i32
    %c0_i32_0 = arith.constant 0 : i32
    return %c0_i32, %arg0 : i32, i32
  }
}

</mosaic_0001>

<bundles_post_ra>
// kernel: tpu_custom_call.1
= control target key start
LH: loop header
LB: loop body
LE: loop exit
PB: predicated region body
PF: predicated region fallthrough
CT: control target
= control target key end

     0   :  { %vm44_vm0 = vcmask 1044480   ;;  %vm37_vm1 = vcmask 39936   ;;  %v280_v4 = vmov 0   ;;  %s349_s0 = inlined_call_operand.vmem [shape: f32[5,8], index: 0, kind: input, shape index: {}]   ;;  %s350_s1 = inlined_call_operand.vmem [shape: f32[10,5], index: 1, kind: input, shape index: {}]   ;;  %s351_s2 = inlined_call_operand.vmem [shape: f32[10,1], index: 2, kind: input, shape index: {}]   ;;  %s352_s3 = inlined_call_operand.vmem [shape: f32[1,10], index: 3, kind: input, shape index: {}]   ;;  %s353_s4 = inlined_call_operand.<no memory space> [shape: f32[1], index: 4, kind: input, shape index: {}]   ;;  %s354_s5 = inlined_call_operand.hbm [shape: f32[1,8], index: 5, kind: output, shape index: {}]  }
   0x1   :  { %v22_v0 = vld [vmem:[%s349_s0] sm:$0x1f]  ;;  %v24_v2 = vld [vmem:[%s350_s1 + $0x8] sm:$0x3]  ;;  %255 = vset.pattern.permute.xlu0 %v280_v4 }
   0x2   :  { %v23_v1 = vld [vmem:[%s350_s1] sm:$0xff]  ;;  %233 = vmatprep.subr.msk.mxu0 %vm44_vm0, %v22_v0 }
   0x3   :  { %235 = vmatprep.mubr.msk.f32.mxu0 %vm37_vm1, %v23_v1  ;;  %v25_v3 = vld [vmem:[%s351_s2] sm:$0xff]  ;;  %234 = vmatpush3.msk.msra.mxu0 %vm44_vm0, %v22_v0 }
   0x4   :  { %11 = vsyncpa [#allocation4], 0  ;;  %236 = vmatmul.mubr.msk.f32.vlgmr.msra.gmra.mrb[0].mxu0 %vm37_vm1, %v24_v2  ;;  %29 = vperm.xlu0 %255, %v25_v3   ;;  %v26_v5 = vld [vmem:[%s351_s2 + $0x8] sm:$0x3]  ;;  %v281_v6 = vmov 0.0|0.0   ;;  %vm282_vm2 = vmmov 0   ;;  %v127_v18 = vstv %s353_s4 }
   0x5   :  { %245 = vmatprep.subr.bf16.mxu1 %v281_v6  ;;  %v283_v7 = vmov 0.0   ;;  %vm132_vm3 = vcmask 1041408   ;;  %vm284_vm4 = vmmov 1   ;;  %v125_v17 = vld [vmem:[%s352_s3] sm:$0x1]  ;;  %vm128_vm6 = vcmask 80896  }
   0x6   :  { %242 = vmatprep.mubr.msk.f32.mxu1 %vm282_vm2, %v283_v7  ;;  %vm247_vm5 = vmpackc.low %vm132_vm3, %vm284_vm4  ;;  %s285_s29 = smov [#allocation3]  }
   0x7   :  { %s214_s30 = sshll.u32 %s285_s29, 4  ;;  %s215_s30 = int_to_ptr.vmem [resolvable:$true] %s214_s30 }
   0x8   :  { %34 = vperm.xlu0 %255, %v26_v5   ;;  %s256_s6 = scalar_lea.vmem %s215_s30, 16  ;;  %s260_s7 = scalar_lea.vmem %s215_s30, 32 }
   0x9   :  { %p257_p0 = scmp.ne.s32.totalorder %s215_s30, %s256_s6  ;;  %p261_p1 = scmp.lt.s32.totalorder %s215_s30, %s215_s30 }
   0xa   :  { %p262_p2 = scmp.lt.s32.totalorder %s260_s7, %s256_s6 }
   0xc   :  { %p263_p3 = por %p262_p2, %p261_p1 }
   0xe   :  { %p264_p4 = pnand %p263_p3, %p257_p0 }
  0x83   :  { %v30_v8 = vpop.permute.xlu0 %29 }
  0x87   :  { %v35_v9 = vpop.permute.xlu0 %34 }
  0xd7   :  { %v237_v10 = vpop.f32.mrb[0].mxu0 }
  0xd8   :  { %v120_v11 = vadd.f32 %v237_v10, %v35_v9  ;;  %v114_v12 = vpop.f32.mrb[1].mxu0 }
  0xd9   :  { %v115_v13 = vadd.f32 %v114_v12, %v30_v8 }
  0xda   :  { %v124_v14 = vmax.f32 %v120_v11, 0.0 }
  0xdb   :  { %v123_v15 = vmax.f32 %v115_v13, 0.0 }
  0xdd   :  { %v246_v16 = vpack.c.bf16 %v124_v14, %v123_v15 }
  0xdf   :  { %248 = vmatpush3.bf16.msk.msra.mxu1 %vm247_vm5, %v246_v16 }
  0xe2   :  { %243 = vmatmul.mubr.msk.f32.vlgmr.msra.gmra.mrb[0].mxu1 %vm128_vm6, %v125_v17 }
 0x1b5   :  { %v202_v19 = vpop.f32.mrb[0].mxu1 }
 0x1b6   :  { %v203_v20 = vadd.f32 %v202_v19, %v127_v18  ;;  %v244_v21 = vpop.f32.mrb[1].mxu1 }
 0x1b8   :  { %v206_v22 = vmax.f32 %v203_v20, 0.0 }
 0x1ba   :  { %207 = vst [vmem:[#allocation3] sm:$0x1] %v206_v22 }
 0x1bb   :  { %267 = shalt.err (!%p264_p4)
}
 0x1bc   :  { %s268_s4 = scalar_lea.hbm %s354_s5, 16 }
 0x1bd   :  { %p269_p5 = scmp.ne.s32.totalorder %s354_s5, %s268_s4  ;;  %p272_p6 = scmp.lt.u32.totalorder %s268_s4, %s354_s5 }
 0x1bf   :  { %p274_p7 = pnand %p272_p6, %p269_p5 }
 0x1c1   :  { %277 = shalt.err (!%p274_p7)
}
 0x1c2   :  { %217 = dma.vmem_to_hbm [thread:$0]  %s215_s30, 16, %s354_s5, [#allocation4]  }
 0x1c3   :  { %278 = dma.done.wait [#allocation4], 16  }
 0x1c4   :  { %279 = vsyncadd [#allocation4], 4294967280 }
 0x1c5   :  { %221 = vsyncpa [#allocation4], 1 }

</bundles_post_ra>
